<compile_context>
chip_gen: v7x
topology: tpu7x:2x2x1
jax: 0.10.0
libtpu: 0.0.40
codegen_flags: <defaults>
</compile_context>

<pallas_src>
import copy
import functools
import math

import jax
import jax.numpy as jnp
from jax.experimental import pallas as pl
from jax.experimental.pallas import tpu as pltpu

# Explicit scoped-VMEM cap.  Per-step footprints at the default tiles are a
# few MiB, so 32 MiB is ample headroom on every generation (v5e default is
# only 16 MiB; v7x physical VMEM is 64 MiB).
_VMEM_LIMIT = 32 * 1024 * 1024


# ----------------------------------------------------------------------------
# Tiling / padding helpers
# ----------------------------------------------------------------------------
def _round_up(x, m):
    return ((x + m - 1) // m) * m


def _tile(dim, preferred):
    """Tile choice: `preferred` if it divides `dim`; the full dim if the dim is
    small (< preferred); otherwise `preferred` and the caller pads `dim` up.
    This never silently promotes a *large* dim to a single huge tile."""
    if dim % preferred == 0:
        return preferred
    if dim < preferred:
        return dim
    return preferred


def _tile_div(dim, preferred):
    """Largest 128-multiple <= preferred dividing `dim` (lane dims must stay
    128-aligned), or `dim` itself when dim <= preferred."""
    if dim <= preferred:
        return dim
    t = (preferred // 128) * 128
    while t >= 128:
        if dim % t == 0:
            return t
        t -= 128
    return dim


def _pad_axis(x, axis, target):
    pad = target - x.shape[axis]
    if pad <= 0:
        return x
    widths = [(0, 0)] * x.ndim
    widths[axis] = (0, pad)
    return jnp.pad(x, widths)


# ----------------------------------------------------------------------------
# Tiled matmul (+ fused input add, + bias, optional fused ReLU)
# ----------------------------------------------------------------------------
def _matmul_kernel(*refs, activation, fuse_add):
    if fuse_add:
        x_ref, a_ref, w_ref, b_ref, o_ref, acc_ref = refs
    else:
        x_ref, w_ref, b_ref, o_ref, acc_ref = refs

    @pl.when(pl.program_id(2) == 0)
    def _():
        acc_ref[...] = jnp.zeros_like(acc_ref)

    x = x_ref[...]
    if fuse_add:
        x = x + a_ref[...]          # e.g. src + pos, fused (no HBM round trip)
    x = x.astype(w_ref.dtype)       # bf16 operands -> single-pass MXU mode
    acc_ref[...] += jnp.dot(x, w_ref[...], preferred_element_type=jnp.float32)

    @pl.when(pl.program_id(2) == pl.num_programs(2) - 1)
    def _():
        y = acc_ref[...] + b_ref[...]
        if activation == "relu":
            y = jnp.maximum(y, 0.0)
        o_ref[...] = y.reshape(o_ref.shape).astype(o_ref.dtype)


def pallas_linear(x, w, b, *, add=None, activation=None, out_dtype=jnp.float32,
                  out_groups=None, tm=256, tn=256, tk=512):
    """y = act((x [+ add]) @ w + b).

    x/add: (M, K) -- cast to w.dtype (bf16) inside the kernel.
    w: (K, N) bf16, b: (N,) f32.
    out_groups=None -> (M, N).
    out_groups=g    -> (g, M, N//g): w's columns are g concatenated groups and
    the output lands directly in an attention-friendly layout (fused QKV
    projection without any HBM transpose).  Requires (N//g) % 128 == 0 or
    N//g <= tn to keep lane-aligned blocks.
    """
    m, k = x.shape
    k2, n = w.shape
    assert k == k2 and b.shape == (n,)

    tm_ = _tile(m, tm)
    mp = _round_up(m, tm_)
    tk_ = _tile(k, tk)
    kp = _round_up(k, tk_)

    x_p = _pad_axis(_pad_axis(x, 0, mp), 1, kp)
    add_p = None if add is None else _pad_axis(_pad_axis(add, 0, mp), 1, kp)
    w_p = _pad_axis(w, 0, kp)
    b_p = b.astype(jnp.float32)

    if out_groups is None:
        tn_ = _tile(n, tn)
        np_ = _round_up(n, tn_)
        w_p = _pad_axis(w_p, 1, np_)
        b_p = _pad_axis(b_p, 0, np_)
        n_grid = np_ // tn_
        out_shape = jax.ShapeDtypeStruct((mp, np_), out_dtype)
        out_spec = pl.BlockSpec((tm_, tn_), lambda i, j, kk: (i, j))
    else:
        g = out_groups
        assert n % g == 0
        gd = n // g
        tn_ = _tile_div(gd, tn)
        assert gd % tn_ == 0
        bpg = gd // tn_                              # N blocks per group
        n_grid = g * bpg
        out_shape = jax.ShapeDtypeStruct((g, mp, gd), out_dtype)
        out_spec = pl.BlockSpec(
            (1, tm_, tn_), lambda i, j, kk: (j // bpg, i, j % bpg))

    b2d = b_p.reshape(1, -1)

    inputs = [x_p]
    in_specs = [pl.BlockSpec((tm_, tk_), lambda i, j, kk: (i, kk))]
    if add_p is not None:
        inputs.append(add_p)
        in_specs.append(pl.BlockSpec((tm_, tk_), lambda i, j, kk: (i, kk)))
    inputs.append(w_p)
    in_specs.append(pl.BlockSpec((tk_, tn_), lambda i, j, kk: (kk, j)))
    inputs.append(b2d)
    in_specs.append(pl.BlockSpec((1, tn_), lambda i, j, kk: (0, j)))

    kernel = functools.partial(_matmul_kernel, activation=activation,
                               fuse_add=add_p is not None)
    out = pl.pallas_call(
        kernel,
        out_shape=out_shape,
        grid=(mp // tm_, n_grid, kp // tk_),
        in_specs=in_specs,
        out_specs=out_spec,
        scratch_shapes=[pltpu.VMEM((tm_, tn_), jnp.float32)],
        compiler_params=pltpu.CompilerParams(
            dimension_semantics=("parallel", "parallel", "arbitrary"),
            vmem_limit_bytes=_VMEM_LIMIT),
    )(*inputs)

    if out_groups is None:
        if out.shape != (m, n):
            out = out[:m, :n]
    else:
        if mp != m:
            out = out[:, :m, :]
    return out


# ----------------------------------------------------------------------------
# LayerNorm (optionally with the residual add fused: LN(x + res))
# ----------------------------------------------------------------------------
def _layernorm_kernel(*refs, eps, has_res):
    if has_res:
        x_ref, r_ref, w_ref, b_ref, o_ref = refs
    else:
        x_ref, w_ref, b_ref, o_ref = refs
    x = x_ref[...].astype(jnp.float32)
    if has_res:
        x = x + r_ref[...].astype(jnp.float32)
    mean = jnp.mean(x, axis=-1, keepdims=True)
    xc = x - mean
    var = jnp.mean(xc * xc, axis=-1, keepdims=True)
    inv = jax.lax.rsqrt(var + eps)
    o_ref[...] = (xc * inv * w_ref[...] + b_ref[...]).astype(o_ref.dtype)


def pallas_layernorm(x, w, b, *, residual=None, eps=1e-5,
                     out_dtype=jnp.float32, tm=512):
    """LayerNorm over the last dim of x (+ residual, fused).  x: (M, E)."""
    m, e = x.shape
    tm_ = _tile(m, tm)
    mp = _round_up(m, tm_)

    inputs = [_pad_axis(x, 0, mp)]
    in_specs = [pl.BlockSpec((tm_, e), lambda i: (i, 0))]
    if residual is not None:
        inputs.append(_pad_axis(residual, 0, mp))
        in_specs.append(pl.BlockSpec((tm_, e), lambda i: (i, 0)))
    inputs += [w.reshape(1, e).astype(jnp.float32),
               b.reshape(1, e).astype(jnp.float32)]
    in_specs += [pl.BlockSpec((1, e), lambda i: (0, 0)),
                 pl.BlockSpec((1, e), lambda i: (0, 0))]

    kernel = functools.partial(_layernorm_kernel, eps=eps,
                               has_res=residual is not None)
    out = pl.pallas_call(
        kernel,
        out_shape=jax.ShapeDtypeStruct((mp, e), out_dtype),
        grid=(mp // tm_,),
        in_specs=in_specs,
        out_specs=pl.BlockSpec((tm_, e), lambda i: (i, 0)),
        compiler_params=pltpu.CompilerParams(
            dimension_semantics=("parallel",),
            vmem_limit_bytes=_VMEM_LIMIT),
    )(*inputs)
    return out if mp == m else out[:m]


# ----------------------------------------------------------------------------
# Flash-style attention (online softmax).  Heads are sliced inside the kernel
# (static column slices of lane-packed (tq, E) / (tk, E) blocks), so no HBM
# head transposes are needed and the output store stays lane-dense (1, tq, E).
# ----------------------------------------------------------------------------
def _flash_attn_kernel(q_ref, k_ref, v_ref, o_ref, m_sc, l_sc, acc_sc, *,
                       num_heads, head_dim, causal, tq, tk, kv_len):
    qi = pl.program_id(1)
    ki = pl.program_id(2)

    @pl.when(ki == 0)
    def _():
        m_sc[...] = jnp.full(m_sc.shape, -jnp.inf, m_sc.dtype)
        l_sc[...] = jnp.zeros(l_sc.shape, l_sc.dtype)
        acc_sc[...] = jnp.zeros(acc_sc.shape, acc_sc.dtype)

    def _step():
        q = q_ref[0, 0]                      # (tq, E) bf16, softmax scale folded
        k = k_ref[0, 0]                      # (tk, E) bf16
        v = v_ref[0, 0]                      # (tk, E) bf16
        mask = None
        if causal or (kv_len is not None):
            col = ki * tk + jax.lax.broadcasted_iota(jnp.int32, (tq, tk), 1)
            if causal:
                row = qi * tq + jax.lax.broadcasted_iota(jnp.int32, (tq, tk), 0)
                mask = col <= row
            if kv_len is not None:           # padded KV columns
                km = col < kv_len
                mask = km if mask is None else jnp.logical_and(mask, km)
        for h in range(num_heads):
            lo = h * head_dim
            hi = lo + head_dim
            s = jax.lax.dot_general(q[:, lo:hi], k[:, lo:hi],
                                    (((1,), (1,)), ((), ())),
                                    preferred_element_type=jnp.float32)
            if mask is not None:
                s = jnp.where(mask, s, -1e30)    # finite mask -> no inf-inf NaN
            m_prev = m_sc[:, h:h + 1]
            m_new = jnp.maximum(m_prev, jnp.max(s, axis=-1, keepdims=True))
            alpha = jnp.exp(m_prev - m_new)
            p = jnp.exp(s - m_new)
            l_sc[:, h:h + 1] = alpha * l_sc[:, h:h + 1] + jnp.sum(
                p, axis=-1, keepdims=True)
            acc_sc[:, lo:hi] = alpha * acc_sc[:, lo:hi] + jnp.dot(
                p.astype(v.dtype), v[:, lo:hi],
                preferred_element_type=jnp.float32)
            m_sc[:, h:h + 1] = m_new

    if causal:
        # skip KV tiles entirely above the causal diagonal
        @pl.when(ki * tk <= qi * tq + (tq - 1))
        def _():
            _step()
    else:
        _step()

    @pl.when(ki == pl.num_programs(2) - 1)
    def _():
        for h in range(num_heads):
            lo = h * head_dim
            hi = lo + head_dim
            inv = pl.reciprocal(l_sc[:, h:h + 1], approx=False)
            o_ref[0, :, lo:hi] = (acc_sc[:, lo:hi] * inv).astype(o_ref.dtype)


def pallas_flash_attention(q_arr, k_arr, v_arr, *, q_idx, k_idx, v_idx,
                           num_heads, head_dim, causal=False,
                           out_dtype=jnp.bfloat16, tq=128, tk=256):
    """q/k/v_arr: (G, B, S, E); the leading index (q_idx/k_idx/v_idx) selects
    which slot of a fused projection to read (the same array may be passed for
    several operands).  Returns (B, Sq, E)."""
    e = num_heads * head_dim
    _, b, sq, eq = q_arr.shape
    assert eq == e and k_arr.shape[3] == e and v_arr.shape[3] == e
    sk = k_arr.shape[2]
    assert v_arr.shape[2] == sk

    tq_ = _tile(sq, tq)
    sqp = _round_up(sq, tq_)
    tk_ = _tile(sk, tk)
    skp = _round_up(sk, tk_)

    q_p = _pad_axis(q_arr, 2, sqp)
    if k_arr is q_arr and skp == sqp:
        k_p = q_p
    else:
        k_p = _pad_axis(k_arr, 2, skp)
    if v_arr is k_arr:
        v_p = k_p
    elif v_arr is q_arr and skp == sqp:
        v_p = q_p
    else:
        v_p = _pad_axis(v_arr, 2, skp)

    kv_len = sk if skp != sk else None

    kernel = functools.partial(
        _flash_attn_kernel, num_heads=num_heads, head_dim=head_dim,
        causal=causal, tq=tq_, tk=tk_, kv_len=kv_len)

    out = pl.pallas_call(
        kernel,
        out_shape=jax.ShapeDtypeStruct((b, sqp, e), out_dtype),
        grid=(b, sqp // tq_, skp // tk_),
        in_specs=[
            pl.BlockSpec((1, 1, tq_, e), lambda bi, qi, ki: (q_idx, bi, qi, 0)),
            pl.BlockSpec((1, 1, tk_, e), lambda bi, qi, ki: (k_idx, bi, ki, 0)),
            pl.BlockSpec((1, 1, tk_, e), lambda bi, qi, ki: (v_idx, bi, ki, 0)),
        ],
        out_specs=pl.BlockSpec((1, tq_, e), lambda bi, qi, ki: (bi, qi, 0)),
        scratch_shapes=[
            pltpu.VMEM((tq_, num_heads), jnp.float32),   # running max (lane-dense)
            pltpu.VMEM((tq_, num_heads), jnp.float32),   # running denominator
            pltpu.VMEM((tq_, e), jnp.float32),           # output accumulator
        ],
        compiler_params=pltpu.CompilerParams(
            dimension_semantics=("parallel", "parallel", "arbitrary"),
            vmem_limit_bytes=_VMEM_LIMIT),
    )(q_p, k_p, v_p)

    return out if sqp == sq else out[:, :sq]


# ----------------------------------------------------------------------------
# Modules (parameter setup & glue in plain JAX; internals are batch-first)
# ----------------------------------------------------------------------------
class MultiheadAttention:
    """Forward of the UniTAB flash-attention MultiheadAttention."""

    def __init__(self, embed_dim, num_heads, dropout=0.0, bias=True,
                 batch_first=False, cross_attn=False, key=None):
        assert embed_dim % num_heads == 0
        self.embed_dim = embed_dim
        self.num_heads = num_heads
        self.head_dim = embed_dim // num_heads
        self.cross_attn = cross_attn
        self.batch_first = batch_first
        # Reference builds FlashAttention with softmax_scale=sqrt(head_dim)
        # (NOT 1/sqrt).  Reproduced exactly (likely a bug in the reference).
        self.softmax_scale = math.sqrt(self.head_dim)
        # TODO(synk): attention dropout not implemented (module default p=0.0).

        if key is None:
            key = jax.random.PRNGKey(0)
        k1, k2 = jax.random.split(key, 2)
        E = embed_dim
        limit = math.sqrt(6.0 / (E + E))                       # xavier_uniform_
        w_in = jax.random.uniform(k1, (3, E, E), jnp.float32, -limit, limit)
        # softmax scale folded into the Q projection (saves a per-step VPU mul)
        w_q = (w_in[0] * self.softmax_scale).astype(jnp.bfloat16)
        w_k = w_in[1].astype(jnp.bfloat16)
        w_v = w_in[2].astype(jnp.bfloat16)
        self.w_q, self.w_k, self.w_v = w_q, w_k, w_v
        self.w_qk = jnp.concatenate([w_q, w_k], axis=1)        # (E, 2E) bf16
        self.w_qkv = jnp.concatenate([w_q, w_k, w_v], axis=1)  # (E, 3E) bf16
        self.b_q = jnp.zeros((E,), jnp.float32)                # zeros per reference
        self.b_k = jnp.zeros((E,), jnp.float32)
        self.b_v = jnp.zeros((E,), jnp.float32)
        self.b_qk = jnp.zeros((2 * E,), jnp.float32)
        self.b_qkv = jnp.zeros((3 * E,), jnp.float32)
        wlim = 1.0 / math.sqrt(E)
        w_out = jax.random.uniform(k2, (E, E), jnp.float32, -wlim, wlim)
        self.w_out = w_out.T.astype(jnp.bfloat16)              # (E_in, E_out) bf16
        self.b_out = jnp.zeros((E,), jnp.float32)
        # Fused (grouped) projections need lane-aligned E blocks.
        self._fused_ok = (E % 128 == 0)

    def forward_bsf(self, query, key, value, qk_pos=None, causal=False):
        """Batch-first core: query/key/value (B, S, E) f32; qk_pos is added to
        the query/key projection input inside the matmul kernel."""
        E, H, D = self.embed_dim, self.num_heads, self.head_dim
        B, Sq, _ = query.shape
        Sk = key.shape[1]
        assert qk_pos is None or key is query
        use_causal = bool(causal) and not self.cross_attn

        q2d = query.reshape(B * Sq, E)
        pos2d = None if qk_pos is None else qk_pos.reshape(B * Sq, E)

        if (key is query) and self._fused_ok:
            if (value is query) and (qk_pos is None):
                # one fused (E, 3E) projection -> (3, B, S, E)
                qkv = pallas_linear(q2d, self.w_qkv, self.b_qkv, out_groups=3,
                                    out_dtype=jnp.bfloat16).reshape(3, B, Sq, E)
                q_arr = k_arr = v_arr = qkv
                qi_, ki_, vi_ = 0, 1, 2
            else:
                # encoder case: fused (E, 2E) on (src + pos), separate V on src
                qk = pallas_linear(q2d, self.w_qk, self.b_qk, add=pos2d,
                                   out_groups=2,
                                   out_dtype=jnp.bfloat16).reshape(2, B, Sq, E)
                v2d = value.reshape(B * Sk, E)
                v_arr = pallas_linear(v2d, self.w_v, self.b_v,
                                      out_dtype=jnp.bfloat16).reshape(1, B, Sk, E)
                q_arr = k_arr = qk
                qi_, ki_, vi_ = 0, 1, 0
        else:
            # separate projections (also the path for E % 128 != 0)
            k2d = q2d if key is query else key.reshape(B * Sk, E)
            v2d = q2d if value is query else (
                k2d if value is key else value.reshape(B * Sk, E))
            q_arr = pallas_linear(q2d, self.w_q, self.b_q, add=pos2d,
                                  out_dtype=jnp.bfloat16).reshape(1, B, Sq, E)
            k_arr = pallas_linear(k2d, self.w_k, self.b_k, add=pos2d,
                                  out_dtype=jnp.bfloat16).reshape(1, B, Sk, E)
            v_arr = pallas_linear(v2d, self.w_v, self.b_v,
                                  out_dtype=jnp.bfloat16).reshape(1, B, Sk, E)
            qi_ = ki_ = vi_ = 0

        ctx = pallas_flash_attention(q_arr, k_arr, v_arr,
                                     q_idx=qi_, k_idx=ki_, v_idx=vi_,
                                     num_heads=H, head_dim=D,
                                     causal=use_causal)          # (B, Sq, E) bf16
        out = pallas_linear(ctx.reshape(B * Sq, E), self.w_out, self.b_out,
                            out_dtype=jnp.float32)
        return out.reshape(B, Sq, E)

    def __call__(self, query, key, value, key_padding_mask=None, causal=False):
        # Reference (seq-first) signature.
        # TODO(synk): key_padding_mask (flash-attn unpad path) not implemented.
        assert key_padding_mask is None, "key_padding_mask not supported"
        qb = jnp.transpose(query, (1, 0, 2))
        kb = qb if key is query else jnp.transpose(key, (1, 0, 2))
        vb = qb if value is query else (
            kb if value is key else jnp.transpose(value, (1, 0, 2)))
        out = self.forward_bsf(qb, kb, vb, causal=causal)
        return jnp.transpose(out, (1, 0, 2))


class TransformerEncoderLayer:
    """Post-norm DETR/UniTAB encoder layer (forward_post semantics)."""

    def __init__(self, d_model, nhead, dim_feedforward=2048, dropout=0.1,
                 activation="relu", normalize_before=False, key=None):
        assert activation == "relu", "only relu implemented"
        assert not normalize_before  # TODO(synk): pre-norm variant not implemented
        # TODO(synk): dropout layers treated as identity (inference / p=0 path).
        if key is None:
            key = jax.random.PRNGKey(0)
        k_attn, k_w1, k_w2 = jax.random.split(key, 3)
        self.d_model = d_model
        self.self_attn = MultiheadAttention(d_model, nhead, dropout=dropout,
                                            key=k_attn)
        lim1 = 1.0 / math.sqrt(d_model)
        self.w1 = jax.random.uniform(k_w1, (d_model, dim_feedforward),
                                     jnp.float32, -lim1, lim1).astype(jnp.bfloat16)
        self.b1 = jnp.zeros((dim_feedforward,), jnp.float32)
        lim2 = 1.0 / math.sqrt(dim_feedforward)
        self.w2 = jax.random.uniform(k_w2, (dim_feedforward, d_model),
                                     jnp.float32, -lim2, lim2).astype(jnp.bfloat16)
        self.b2 = jnp.zeros((d_model,), jnp.float32)
        self.ln1_w = jnp.ones((d_model,), jnp.float32)
        self.ln1_b = jnp.zeros((d_model,), jnp.float32)
        self.ln2_w = jnp.ones((d_model,), jnp.float32)
        self.ln2_b = jnp.zeros((d_model,), jnp.float32)

    def forward_bsf(self, src, pos=None):
        """Batch-first internal forward: src/pos are (B, S, E) f32."""
        B, S, E = src.shape
        x2d = src.reshape(B * S, E)
        # q = k = src + pos (the add is fused into the QK projection kernel)
        attn = self.self_attn.forward_bsf(src, src, src, qk_pos=pos)
        # src = LN1(src + attn)   (residual add fused into the LN kernel)
        x2d = pallas_layernorm(x2d, self.ln1_w, self.ln1_b,
                               residual=attn.reshape(B * S, E))
        # FFN: bf16 weights/activations, fused ReLU, bf16 intermediate
        h = pallas_linear(x2d, self.w1, self.b1, activation="relu",
                          out_dtype=jnp.bfloat16)
        ffn = pallas_linear(h, self.w2, self.b2, out_dtype=jnp.float32)
        # src = LN2(src + ffn)
        x2d = pallas_layernorm(x2d, self.ln2_w, self.ln2_b, residual=ffn)
        return x2d.reshape(B, S, E)

    def __call__(self, src, src_mask=None, src_key_padding_mask=None, pos=None):
        # TODO(synk): src_mask / src_key_padding_mask not implemented.
        assert src_mask is None and src_key_padding_mask is None
        src_b = jnp.transpose(src, (1, 0, 2))
        pos_b = None if pos is None else jnp.transpose(pos, (1, 0, 2))
        out = self.forward_bsf(src_b, pos_b)
        return jnp.transpose(out, (1, 0, 2))


def _get_clones(module, n):
    return [copy.deepcopy(module) for _ in range(n)]


class TransformerEncoder:
    def __init__(self, encoder_layer, num_layers, norm=None):
        self.layers = _get_clones(encoder_layer, num_layers)
        self.num_layers = num_layers
        self.norm = norm   # None or (weight, bias) for a final LayerNorm

    def __call__(self, src, mask=None, src_key_padding_mask=None, pos=None):
        assert mask is None and src_key_padding_mask is None
        # one transpose in / one out for the whole stack (layers run batch-first)
        output = jnp.transpose(src, (1, 0, 2))
        pos_b = None if pos is None else jnp.transpose(pos, (1, 0, 2))
        for layer in self.layers:
            output = layer.forward_bsf(output, pos_b)
        if self.norm is not None:
            B, S, E = output.shape
            w, b = self.norm
            output = pallas_layernorm(output.reshape(B * S, E),
                                      w, b).reshape(B, S, E)
        return jnp.transpose(output, (1, 0, 2))


# ----------------------------------------------------------------------------
if __name__ == "__main__":
    root = jax.random.PRNGKey(0)
    kx, kpos, kp, kx2, kpos2, kp2 = jax.random.split(root, 6)

    # Config 1: tiny dims (exercises small full-dim tiles / unfused QKV path).
    S, B, E, H, FFN, L = 8, 2, 32, 4, 64, 2
    src = jax.random.normal(kx, (S, B, E), jnp.float32)
    pos = 0.1 * jax.random.normal(kpos, (S, B, E), jnp.float32)

    layer = TransformerEncoderLayer(E, H, dim_feedforward=FFN, dropout=0.0,
                                    key=kp)
    encoder = TransformerEncoder(layer, num_layers=L, norm=None)

    out = encoder(src, mask=None, src_key_padding_mask=None, pos=pos)
    out = jax.block_until_ready(out)
    assert out.shape == (S, B, E), out.shape
    assert out.dtype == jnp.float32, out.dtype
    assert bool(jnp.all(jnp.isfinite(out)))

    # causal path of the flash-attention kernel (separate-projection branch)
    cout = jax.block_until_ready(layer.self_attn(src, src, src, causal=True))
    assert cout.shape == (S, B, E)
    assert bool(jnp.all(jnp.isfinite(cout)))

    # Config 2: E=128 exercises the fused (grouped) QKV projections,
    # lane-dense attention output stores, and a final encoder LayerNorm.
    S2, B2, E2, H2, FFN2, L2 = 8, 2, 128, 4, 256, 1
    src2 = jax.random.normal(kx2, (S2, B2, E2), jnp.float32)
    pos2 = 0.1 * jax.random.normal(kpos2, (S2, B2, E2), jnp.float32)

    layer2 = TransformerEncoderLayer(E2, H2, dim_feedforward=FFN2, dropout=0.0,
                                     key=kp2)
    encoder2 = TransformerEncoder(layer2, num_layers=L2,
                                  norm=(jnp.ones((E2,), jnp.float32),
                                        jnp.zeros((E2,), jnp.float32)))
    out2 = jax.block_until_ready(
        encoder2(src2, mask=None, src_key_padding_mask=None, pos=pos2))
    assert out2.shape == (S2, B2, E2) and out2.dtype == jnp.float32
    assert bool(jnp.all(jnp.isfinite(out2)))

    cout2 = jax.block_until_ready(layer2.self_attn(src2, src2, src2, causal=True))
    assert cout2.shape == (S2, B2, E2)
    assert bool(jnp.all(jnp.isfinite(cout2)))

    print("KERNEL_OK")
</pallas_src>

<mosaic_0001>
module attributes {stable_mosaic.version = 11 : i64} {
  func.func @_matmul_kernel(%arg0: i32, %arg1: i32, %arg2: i32, %arg3: memref<16x32xf32, #tpu.memory_space<vmem>>, %arg4: memref<16x32xf32, #tpu.memory_space<vmem>>, %arg5: memref<32x32xbf16, #tpu.memory_space<vmem>>, %arg6: memref<1x32xf32, #tpu.memory_space<vmem>>, %arg7: memref<16x32xbf16, #tpu.memory_space<vmem>>, %arg8: memref<16x32xf32, #tpu.memory_space<vmem>>) attributes {dimension_semantics = [#tpu.dimension_semantics<parallel>, #tpu.dimension_semantics<parallel>, #tpu.dimension_semantics<arbitrary>], iteration_bounds = array<i64: 1, 1, 1>, scalar_prefetch = 0 : i64, scratch_operands = 1 : i64, tpu.core_type = #tpu.core_type<tc>, window_params = [{transform_indices = @transform_0, window_bounds = array<i64: 16, 32>}, {transform_indices = @transform_1, window_bounds = array<i64: 16, 32>}, {transform_indices = @transform_2, window_bounds = array<i64: 32, 32>}, {transform_indices = @transform_3, window_bounds = array<i64: 1, 32>}, {transform_indices = @transform_4, window_bounds = array<i64: 16, 32>}]} {
    %c0_i32 = arith.constant 0 : i32
    %0 = arith.cmpi eq, %arg2, %c0_i32 : i32
    %1 = arith.extui %0 : i1 to i32
    %c0_i32_0 = arith.constant 0 : i32
    %2 = arith.cmpi ne, %1, %c0_i32_0 : i32
    scf.if %2 {
      %cst_12 = arith.constant 0.000000e+00 : f32
      %15 = vector.broadcast %cst_12 : f32 to vector<16x32xf32>
      %c0_13 = arith.constant 0 : index
      %c0_14 = arith.constant 0 : index
      %16 = vector.load %arg8[%c0_13, %c0_14] : memref<16x32xf32, #tpu.memory_space<vmem>>, vector<16x32xf32>
      tpu.vector_store %arg8[%c0_13, %c0_14], %15 {strides = array<i32>} : memref<16x32xf32, #tpu.memory_space<vmem>>, vector<16x32xf32>,
    } else {
    }
    %c0 = arith.constant 0 : index
    %c0_1 = arith.constant 0 : index
    %3 = vector.load %arg3[%c0, %c0_1] : memref<16x32xf32, #tpu.memory_space<vmem>>, vector<16x32xf32>
    %c0_2 = arith.constant 0 : index
    %c0_3 = arith.constant 0 : index
    %4 = vector.load %arg4[%c0_2, %c0_3] : memref<16x32xf32, #tpu.memory_space<vmem>>, vector<16x32xf32>
    %5 = arith.addf %3, %4 : vector<16x32xf32>
    %6 = arith.truncf %5 : vector<16x32xf32> to vector<16x32xbf16>
    %c0_4 = arith.constant 0 : index
    %c0_5 = arith.constant 0 : index
    %7 = vector.load %arg8[%c0_4, %c0_5] : memref<16x32xf32, #tpu.memory_space<vmem>>, vector<16x32xf32>
    %c0_6 = arith.constant 0 : index
    %c0_7 = arith.constant 0 : index
    %8 = vector.load %arg5[%c0_6, %c0_7] : memref<32x32xbf16, #tpu.memory_space<vmem>>, vector<32x32xbf16>
    %cst = arith.constant dense<0.000000e+00> : vector<16x32xf32>
    %9 = tpu.matmul %6, %8, %cst {dimension_numbers = #tpu.dot_dimension_numbers<[1], [0], [0], [1], [0, 0, 1, 1], [], []>} : vector<16x32xbf16>, vector<32x32xbf16>, vector<16x32xf32> -> vector<16x32xf32>
    %10 = arith.addf %7, %9 : vector<16x32xf32>
    %c0_8 = arith.constant 0 : index
    %c0_9 = arith.constant 0 : index
    %11 = vector.load %arg8[%c0_8, %c0_9] : memref<16x32xf32, #tpu.memory_space<vmem>>, vector<16x32xf32>
    tpu.vector_store %arg8[%c0_8, %c0_9], %10 {strides = array<i32>} : memref<16x32xf32, #tpu.memory_space<vmem>>, vector<16x32xf32>,
    %c0_i32_10 = arith.constant 0 : i32
    %12 = arith.cmpi eq, %arg2, %c0_i32_10 : i32
    %13 = arith.extui %12 : i1 to i32
    %c0_i32_11 = arith.constant 0 : i32
    %14 = arith.cmpi ne, %13, %c0_i32_11 : i32
    scf.if %14 {
      %c0_12 = arith.constant 0 : index
      %c0_13 = arith.constant 0 : index
      %15 = vector.load %arg8[%c0_12, %c0_13] : memref<16x32xf32, #tpu.memory_space<vmem>>, vector<16x32xf32>
      %c0_14 = arith.constant 0 : index
      %c0_15 = arith.constant 0 : index
      %16 = vector.load %arg6[%c0_14, %c0_15] : memref<1x32xf32, #tpu.memory_space<vmem>>, vector<1x32xf32>
      %17 = vector.broadcast %16 : vector<1x32xf32> to vector<16x32xf32>
      %18 = arith.addf %15, %17 : vector<16x32xf32>
      %19 = arith.truncf %18 : vector<16x32xf32> to vector<16x32xbf16>
      %c0_16 = arith.constant 0 : index
      %c0_17 = arith.constant 0 : index
      %20 = vector.load %arg7[%c0_16, %c0_17] : memref<16x32xbf16, #tpu.memory_space<vmem>>, vector<16x32xbf16>
      tpu.vector_store %arg7[%c0_16, %c0_17], %19 {strides = array<i32>} : memref<16x32xbf16, #tpu.memory_space<vmem>>, vector<16x32xbf16>,
    } else {
    }
    return
  }
  func.func @transform_0(%arg0: i32, %arg1: i32, %arg2: i32) -> (i32, i32) {
    %c0_i32 = arith.constant 0 : i32
    return %arg0, %arg2 : i32, i32
  }
  func.func @transform_1(%arg0: i32, %arg1: i32, %arg2: i32) -> (i32, i32) {
    %c0_i32 = arith.constant 0 : i32
    return %arg0, %arg2 : i32, i32
  }
  func.func @transform_2(%arg0: i32, %arg1: i32, %arg2: i32) -> (i32, i32) {
    %c0_i32 = arith.constant 0 : i32
    return %arg2, %arg1 : i32, i32
  }
  func.func @transform_3(%arg0: i32, %arg1: i32, %arg2: i32) -> (i32, i32) {
    %c0_i32 = arith.constant 0 : i32
    %c0_i32_0 = arith.constant 0 : i32
    return %c0_i32, %arg1 : i32, i32
  }
  func.func @transform_4(%arg0: i32, %arg1: i32, %arg2: i32) -> (i32, i32) {
    %c0_i32 = arith.constant 0 : i32
    return %arg0, %arg1 : i32, i32
  }
}

</mosaic_0001>

<bundles_post_ra>
// kernel: tpu_custom_call.1
= control target key start
LH: loop header
LB: loop body
LE: loop exit
PB: predicated region body
PF: predicated region fallthrough
CT: control target
= control target key end

     0   :  { %9 = vsyncpa [#allocation4], 0  ;;  %s413_s0 = inlined_call_operand.hbm [shape: f32[16,32], index: 0, kind: input, shape index: {}]   ;;  %s414_s1 = inlined_call_operand.hbm [shape: f32[16,32], index: 1, kind: input, shape index: {}]   ;;  %s415_s2 = inlined_call_operand.hbm [shape: bf16[32,32], index: 2, kind: input, shape index: {}]   ;;  %s416_s3 = inlined_call_operand.vmem [shape: f32[1,32], index: 3, kind: input, shape index: {}]   ;;  %s417_s4 = inlined_call_operand.hbm [shape: bf16[16,32], index: 4, kind: output, shape index: {}]  }
   0x1   :  { %10 = vsyncpa [#allocation7], 0 }
   0x2   :  { %11 = vsyncpa [#allocation5], 0  ;;  %s309_s15 = smov [#allocation6]   ;;  %s310_s17 = smov [#allocation3]  }
   0x3   :  { %s29_s16 = sshll.u32 %s309_s15, 4  ;;  %s17_s18 = sshll.u32 %s310_s17, 4  ;;  %s30_s16 = int_to_ptr.vmem [resolvable:$true] %s29_s16  ;;  %s344_s18 = int_to_ptr.vmem [resolvable:$true] %s17_s18 }
   0x4   :  { %s215_s21 = scalar_lea.hbm %s414_s1, 256 }
   0x5   :  { %p216_p0 = scmp.ne.s32.totalorder %s414_s1, %s215_s21  ;;  %p219_p1 = scmp.lt.u32.totalorder %s215_s21, %s414_s1 }
   0x7   :  { %p221_p2 = pnand %p219_p1, %p216_p0 }
   0x9   :  { %224 = shalt.err (!%p221_p2)
}
   0xa   :  { %s225_s26 = scalar_lea.vmem %s30_s16, 256  ;;  %p230_p4 = scmp.lt.s32.totalorder %s30_s16, %s30_s16 }
   0xb   :  { %p226_p3 = scmp.ne.s32.totalorder %s30_s16, %s225_s26  ;;  %p231_p5 = scmp.lt.s32.totalorder %s225_s26, %s225_s26 }
   0xd   :  { %p232_p6 = por %p231_p5, %p230_p4 }
   0xf   :  { %p233_p7 = pnand %p232_p6, %p226_p3 }
  0x11   :  { %236 = shalt.err (!%p233_p7)
}
  0x12   :  { %s311_s27 = smov 128   ;;  %s312_s28 = smov 8  }
  0x13   :  { %35 = dma.hbm_to_vmem [thread:$0]  %s414_s1, 256, %s30_s16, [#allocation7], %s311_s27, %s311_s27, %s312_s28  }
  0x14   :  { %s237_s7 = scalar_lea.hbm %s413_s0, 256 }
  0x15   :  { %p238_p8 = scmp.ne.s32.totalorder %s413_s0, %s237_s7  ;;  %p241_p9 = scmp.lt.u32.totalorder %s237_s7, %s413_s0 }
  0x17   :  { %p243_p10 = pnand %p241_p9, %p238_p8 }
  0x19   :  { %246 = shalt.err (!%p243_p10)
}
  0x1a   :  { %s247_s12 = scalar_lea.vmem %s344_s18, 256  ;;  %p252_p12 = scmp.lt.s32.totalorder %s344_s18, %s344_s18 }
  0x1b   :  { %p248_p11 = scmp.ne.s32.totalorder %s344_s18, %s247_s12  ;;  %p253_p13 = scmp.lt.s32.totalorder %s247_s12, %s247_s12 }
  0x1d   :  { %p254_p0 = por %p253_p13, %p252_p12 }
  0x1f   :  { %p255_p1 = pnand %p254_p0, %p248_p11 }
  0x21   :  { %258 = shalt.err (!%p255_p1)
}
  0x22   :  { %23 = dma.hbm_to_vmem [thread:$0]  %s413_s0, 256, %s344_s18, [#allocation4], %s311_s27, %s311_s27, %s312_s28  }
  0x23   :  { %s313_s14 = smov [#allocation8]   ;;  %s259_s19 = scalar_lea.hbm %s415_s2, 256 }
  0x24   :  { %s41_s15 = sshll.u32 %s313_s14, 4  ;;  %p260_p2 = scmp.ne.s32.totalorder %s415_s2, %s259_s19  ;;  %s42_s15 = int_to_ptr.vmem [resolvable:$true] %s41_s15 }
  0x25   :  { %p263_p3 = scmp.lt.u32.totalorder %s259_s19, %s415_s2 }
  0x27   :  { %p265_p4 = pnand %p263_p3, %p260_p2 }
  0x29   :  { %268 = shalt.err (!%p265_p4)
}
  0x2a   :  { %s269_s24 = scalar_lea.vmem %s42_s15, 256  ;;  %p274_p6 = scmp.lt.s32.totalorder %s42_s15, %s42_s15 }
  0x2b   :  { %p270_p5 = scmp.ne.s32.totalorder %s42_s15, %s269_s24  ;;  %p275_p7 = scmp.lt.s32.totalorder %s269_s24, %s269_s24 }
  0x2d   :  { %p276_p8 = por %p275_p7, %p274_p6 }
  0x2f   :  { %p277_p9 = pnand %p276_p8, %p270_p5 }
  0x31   :  { %280 = shalt.err (!%p277_p9)
}
  0x32   :  { %s314_s0 = smov 64   ;;  %s315_s18 = smov 4  }
  0x33   :  { %47 = dma.hbm_to_vmem [thread:$0]  %s415_s2, 256, %s42_s15, [#allocation7], %s314_s0, %s314_s0, %s315_s18  }
  0x34   :  { %303 = dma.done.wait [#allocation4], 256  }
  0x35   :  { %304 = vsyncadd [#allocation4], 4294967040 }
  0x36   :  { %305 = dma.done.wait [#allocation7], 512  }
  0x37   :  { %306 = vsyncadd [#allocation7], 4294966784  ;;  %vm64_vm0 = vcmask 261120   ;;  %v316_v0 = vmov 0.0   ;;  %vm317_vm1 = vmmov 0   ;;  %v213_v1 = vld [vmem:[#allocation8] sm:$0xff]  }
  0x38   :  { %195 = vmatprep.subr.bf16.mxu0 %v316_v0  ;;  %199 = vmatprep.mubr.msk.bf16.mxu0 %vm317_vm1, %v316_v0  ;;  %65 = vst.msk [vmem:[#allocation2] sm:$0xff] %vm64_vm0, %v316_v0  ;;  %66 = vst.msk [vmem:[#allocation2 + $0x8] sm:$0xff] %vm64_vm0, %v316_v0  ;;  %v214_v2 = vld [vmem:[#allocation8 + $0x8] sm:$0xff]   ;;  %v67_v3 = vld [vmem:[#allocation3] sm:$0xff]  ;;  %vm163_vm2 = vcmask 257024   ;;  %s318_s28 = smov [#allocation9]  }
  0x39   :  { %196 = vmatpush3.bf16.msra.mxu0 %v213_v1  ;;  %v68_v4 = vld [vmem:[#allocation3 + $0x8] sm:$0xff]  ;;  %v69_v5 = vld [vmem:[#allocation6] sm:$0xff]  ;;  %v70_v6 = vld [vmem:[#allocation6 + $0x8] sm:$0xff]  ;;  %s171_s29 = sshll.u32 %s318_s28, 4  ;;  %s172_s29 = int_to_ptr.vmem [resolvable:$true] %s171_s29 }
  0x3a   :  { %197 = vmatprep.subr.bf16.mxu0 %v316_v0  ;;  %v71_v7 = vadd.f32 %v69_v5, %v67_v3  ;;  %v72_v8 = vadd.f32 %v70_v6, %v68_v4  ;;  %v187_v18 = vld [vmem:[%s416_s3] ss:$0 sm:$0xff]  ;;  %s281_s30 = scalar_lea.vmem %s172_s29, 128  ;;  %p286_p11 = scmp.lt.s32.totalorder %s172_s29, %s172_s29 }
  0x3b   :  { %p282_p10 = scmp.ne.s32.totalorder %s172_s29, %s281_s30  ;;  %p287_p12 = scmp.lt.s32.totalorder %s281_s30, %s281_s30 }
  0x3c   :  { %v73_v9 = vpack.c.bf16 %v72_v8, %v71_v7 }
  0x3d   :  { %198 = vmatpush3.bf16.msra.mxu0 %v214_v2  ;;  %p288_p13 = por %p287_p12, %p286_p11 }
  0x3f   :  { %v74_v10 = vld [vmem:[#allocation2] sm:$0xff]  ;;  %v75_v12 = vld [vmem:[#allocation2 + $0x8] sm:$0xff]  ;;  %p289_p0 = pnand %p288_p13, %p282_p10 }
  0x40   :  { %200 = vmatmul.mubr.msk.bf16.vlgmr.msra.gmra.mrb[0].mxu0 %vm64_vm0, %v73_v9 }
 0x113   :  { %v130_v11 = vpop.f32.mrb[0].mxu0 }
 0x114   :  { %v137_v13 = vadd.f32 %v130_v11, %v74_v10  ;;  %v201_v14 = vpop.f32.mrb[1].mxu0 }
 0x115   :  { %v133_v15 = vpop.f32.mrb[2].mxu0 }
 0x116   :  { %139 = vst.msk [vmem:[#allocation2] sm:$0xff] %vm64_vm0, %v137_v13  ;;  %v138_v16 = vadd.f32 %v133_v15, %v75_v12  ;;  %v202_v17 = vpop.f32.mrb[3].mxu0 }
 0x118   :  { %140 = vst.msk [vmem:[#allocation2 + $0x8] sm:$0xff] %vm64_vm0, %v138_v16 }
 0x11d   :  { %v144_v19 = vld [vmem:[#allocation2] sm:$0xff] }
 0x11e   :  { %v153_v20 = vadd.f32 %v187_v18, %v144_v19 }
 0x11f   :  { %v145_v21 = vld [vmem:[#allocation2 + $0x8] sm:$0xff] }
 0x120   :  { %v154_v22 = vadd.f32 %v187_v18, %v145_v21  ;;  %v190_v23 = vpack.c.bf16 %v153_v20, %v153_v20 }
 0x122   :  { %v191_v24 = vpack.c.bf16 %v154_v22, %v154_v22  ;;  %164 = vst.msk [vmem:[#allocation9] sm:$0xf] %vm163_vm2, %v190_v23 }
 0x124   :  { %165 = vst.msk [vmem:[#allocation9 + $0x4] sm:$0xf] %vm163_vm2, %v191_v24 }
 0x125   :  { %292 = shalt.err (!%p289_p0)
}
 0x126   :  { %s293_s6 = scalar_lea.hbm %s417_s4, 128 }
 0x127   :  { %p294_p1 = scmp.ne.s32.totalorder %s417_s4, %s293_s6  ;;  %p297_p2 = scmp.lt.u32.totalorder %s293_s6, %s417_s4 }
 0x129   :  { %p299_p3 = pnand %p297_p2, %p294_p1 }
 0x12b   :  { %302 = shalt.err (!%p299_p3)
}
 0x12c   :  { %177 = dma.vmem_to_hbm [thread:$0]  %s172_s29, 128, %s417_s4, [#allocation5], %s314_s0, %s314_s0, %s315_s18  }
 0x12d   :  { %307 = dma.done.wait [#allocation5], 128  }
 0x12e   :  { %308 = vsyncadd [#allocation5], 4294967168 }
 0x12f   :  { %181 = vsyncpa [#allocation4], 1 }
 0x130   :  { %182 = vsyncpa [#allocation7], 1 }
 0x131   :  { %183 = vsyncpa [#allocation5], 1 }

</bundles_post_ra>
